<compile_context>
chip_gen: v5e
topology: v5e:2x2
jax: 0.10.0
libtpu: 0.0.40
codegen_flags: <defaults>
</compile_context>

<pallas_src>
import functools

import jax
import jax.numpy as jnp
from jax.experimental import pallas as pl
from jax.experimental.pallas import tpu as pltpu

LANE = 128
SUBLANE = 8
BN_EPS = 1e-5
NEG_BIG = -1e30
MXU_DTYPE = jnp.bfloat16  # MXU input dtype; accumulation + elementwise stay f32.


def _round_up(x, m):
    return (x + m - 1) // m * m


def _vmem_limit_bytes():
    """64 MiB scoped limit on 128-MiB-VMEM chips (v5e/v6e), 32 MiB on v7x / unknown."""
    cap = 64 << 20
    try:
        cap = int(getattr(pltpu.get_tpu_info(), "vmem_capacity_bytes", cap))
    except Exception:
        pass
    return (64 << 20) if cap >= (128 << 20) else (32 << 20)


def _pick_tile_n(n, in_dim, bottle_p, out_p, vmem_limit, max_tile_n):
    """Largest SUBLANE-aligned batch tile whose double-buffered tiles fit the budget."""
    budget = (vmem_limit * 3) // 4
    resident = 2 * 2 * (in_dim * bottle_p + bottle_p * out_p)          # bf16 weights, 2 bufs
    per_row = 2 * 4 * max(in_dim + bottle_p, bottle_p + 2 * out_p)     # f32 tiles, 2 bufs
    cap = max((budget - resident) // max(per_row, 1), SUBLANE)
    tile = min(int(max_tile_n), int(cap), _round_up(n, SUBLANE))
    tile = max(SUBLANE, (tile // SUBLANE) * SUBLANE)
    return int(tile)


def _fused_fits(n, in_dim, bottle_p, out_p, vmem_limit):
    need = (n * in_dim * 4 + n * bottle_p * 4 + 2 * n * out_p * 4
            + in_dim * bottle_p * 2 + bottle_p * out_p * 2
            + 6 * bottle_p * 4 + 2 * out_p * 4)
    return need <= vmem_limit // 2


# --------------------------------------------------------------------------
# Fused fast path: whole batch in VMEM, single kernel, no feat HBM round-trip.
# --------------------------------------------------------------------------
def _fused_kernel(x_ref, w1_ref, b1_ref, gamma_ref, beta_ref, w2_ref, b2_ref,
                  feat_ref, logits_ref, probs_ref, *, n_classes, n_class_pad):
    x = x_ref[...].astype(MXU_DTYPE)
    feat = jnp.dot(x, w1_ref[...], preferred_element_type=jnp.float32) + b1_ref[...]
    feat_ref[...] = feat

    # Training-mode BatchNorm1d (biased batch variance), folded into one FMA.
    mean = jnp.mean(feat, axis=0, keepdims=True)
    var = jnp.maximum(jnp.mean(feat * feat, axis=0, keepdims=True) - mean * mean, 0.0)
    scale = gamma_ref[...] * jax.lax.rsqrt(var + BN_EPS)
    shift = beta_ref[...] - mean * scale

    bn = feat * scale + shift
    act = jnp.where(bn >= 0, bn, 0.2 * bn)            # LeakyReLU(0.2)

    logits = jnp.dot(act.astype(MXU_DTYPE), w2_ref[...],
                     preferred_element_type=jnp.float32) + b2_ref[...]
    logits_ref[...] = logits

    if n_classes < n_class_pad:                        # mask padded class lanes
        col = jax.lax.broadcasted_iota(jnp.int32, logits.shape, 1)
        masked = jnp.where(col < n_classes, logits, NEG_BIG)
    else:
        masked = logits
    m = jnp.max(masked, axis=-1, keepdims=True)
    e = jnp.exp(masked - m)
    probs_ref[...] = e / jnp.sum(e, axis=-1, keepdims=True)


# --------------------------------------------------------------------------
# Phase 1: feat = x @ W1 + b1 per batch tile + per-tile partial BN stats.
# Fully "parallel" (no cross-iteration accumulator) -> v7x megacore friendly.
# --------------------------------------------------------------------------
def _phase1_kernel(x_ref, w1_ref, b1_ref, feat_ref, psum_ref, pssq_ref,
                   *, tile_n, n_valid):
    x = x_ref[...].astype(MXU_DTYPE)
    feat = jnp.dot(x, w1_ref[...], preferred_element_type=jnp.float32) + b1_ref[...]
    feat_ref[...] = feat

    i = pl.program_id(0)

    if n_valid % tile_n != 0:
        # Only the final (ragged) tile pays for the row mask.
        @pl.when(i == pl.num_programs(0) - 1)
        def _():
            row = jax.lax.broadcasted_iota(jnp.int32, (tile_n, 1), 0) + i * tile_n
            fv = jnp.where(row < n_valid, feat, 0.0)   # garbage OOB rows -> exact 0
            psum_ref[...] = jnp.sum(fv, axis=0, keepdims=True)[None]
            pssq_ref[...] = jnp.sum(fv * fv, axis=0, keepdims=True)[None]

        @pl.when(i < pl.num_programs(0) - 1)
        def _():
            psum_ref[...] = jnp.sum(feat, axis=0, keepdims=True)[None]
            pssq_ref[...] = jnp.sum(feat * feat, axis=0, keepdims=True)[None]
    else:
        psum_ref[...] = jnp.sum(feat, axis=0, keepdims=True)[None]
        pssq_ref[...] = jnp.sum(feat * feat, axis=0, keepdims=True)[None]


# --------------------------------------------------------------------------
# Phase 2: folded BatchNorm -> LeakyReLU(0.2) -> fc -> masked softmax.
# --------------------------------------------------------------------------
def _phase2_kernel(feat_ref, scale_ref, shift_ref, w2_ref, b2_ref,
                   logits_ref, probs_ref, *, n_classes, n_class_pad):
    feat = feat_ref[...]
    bn = feat * scale_ref[...] + shift_ref[...]        # BN folded into one FMA
    act = jnp.where(bn >= 0, bn, 0.2 * bn)             # LeakyReLU(0.2)

    logits = jnp.dot(act.astype(MXU_DTYPE), w2_ref[...],
                     preferred_element_type=jnp.float32) + b2_ref[...]
    logits_ref[...] = logits

    if n_classes < n_class_pad:
        col = jax.lax.broadcasted_iota(jnp.int32, logits.shape, 1)
        masked = jnp.where(col < n_classes, logits, NEG_BIG)
    else:
        masked = logits
    m = jnp.max(masked, axis=-1, keepdims=True)
    e = jnp.exp(masked - m)
    probs_ref[...] = e / jnp.sum(e, axis=-1, keepdims=True)


# --------------------------------------------------------------------------
# Wrapper
# --------------------------------------------------------------------------
def cls_forward(x, w1, b1, gamma, beta, w2, b2, *, max_tile_n=512):
    """Returns [x, feat, logits, probs], mirroring CLS.forward's output list."""
    n, in_dim = x.shape
    bottle = w1.shape[1]
    out_dim = w2.shape[1]
    f32 = jnp.float32

    bottle_p = _round_up(bottle, LANE)
    out_p = _round_up(out_dim, LANE)

    # Small parameter slabs: lane-padded, weights pre-cast to bf16 (MXU input dtype).
    w1_p = jnp.zeros((in_dim, bottle_p), MXU_DTYPE).at[:, :bottle].set(w1.astype(MXU_DTYPE))
    b1_p = jnp.zeros((1, bottle_p), f32).at[:, :bottle].set(b1.reshape(1, -1).astype(f32))
    gamma_p = jnp.ones((1, bottle_p), f32).at[:, :bottle].set(gamma.reshape(1, -1).astype(f32))
    beta_p = jnp.zeros((1, bottle_p), f32).at[:, :bottle].set(beta.reshape(1, -1).astype(f32))
    w2_p = jnp.zeros((bottle_p, out_p), MXU_DTYPE).at[:bottle, :out_dim].set(w2.astype(MXU_DTYPE))
    b2_p = jnp.zeros((1, out_p), f32).at[:, :out_dim].set(b2.reshape(1, -1).astype(f32))

    vmem_limit = _vmem_limit_bytes()
    tile_n = _pick_tile_n(n, in_dim, bottle_p, out_p, vmem_limit, max_tile_n)

    if n <= tile_n and _fused_fits(n, in_dim, bottle_p, out_p, vmem_limit):
        # ---- Fused single-call path: everything resident in VMEM. ----
        feat_p, logits_p, probs_p = pl.pallas_call(
            functools.partial(_fused_kernel, n_classes=out_dim, n_class_pad=out_p),
            out_shape=(
                jax.ShapeDtypeStruct((n, bottle_p), f32),
                jax.ShapeDtypeStruct((n, out_p), f32),
                jax.ShapeDtypeStruct((n, out_p), f32),
            ),
            compiler_params=pltpu.CompilerParams(vmem_limit_bytes=vmem_limit),
        )(x, w1_p, b1_p, gamma_p, beta_p, w2_p, b2_p)
    else:
        n_tiles = pl.cdiv(n, tile_n)

        # ---- Phase 1: bottleneck matmul + per-tile partial BN stats (parallel). ----
        feat_p, psum, pssq = pl.pallas_call(
            functools.partial(_phase1_kernel, tile_n=tile_n, n_valid=n),
            out_shape=(
                jax.ShapeDtypeStruct((n, bottle_p), f32),
                jax.ShapeDtypeStruct((n_tiles, 1, bottle_p), f32),
                jax.ShapeDtypeStruct((n_tiles, 1, bottle_p), f32),
            ),
            grid_spec=pltpu.PrefetchScalarGridSpec(
                num_scalar_prefetch=0,
                grid=(n_tiles,),
                in_specs=[
                    pl.BlockSpec((tile_n, in_dim), lambda i: (i, 0)),     # x tiles (no copy)
                    pl.BlockSpec((in_dim, bottle_p), lambda i: (0, 0)),   # W1 (resident)
                    pl.BlockSpec((1, bottle_p), lambda i: (0, 0)),        # b1
                ],
                out_specs=(
                    pl.BlockSpec((tile_n, bottle_p), lambda i: (i, 0)),   # feat tiles
                    pl.BlockSpec((1, 1, bottle_p), lambda i: (i, 0, 0)),  # partial sum
                    pl.BlockSpec((1, 1, bottle_p), lambda i: (i, 0, 0)),  # partial sumsq
                ),
            ),
            compiler_params=pltpu.CompilerParams(
                dimension_semantics=("parallel",),
                vmem_limit_bytes=vmem_limit),
        )(x, w1_p, b1_p)

        # Tiny (n_tiles, 1, 128) reduction + BN scale/shift fold — one small XLA fusion.
        fsum = jnp.sum(psum, axis=0)
        fssq = jnp.sum(pssq, axis=0)
        mean = fsum / jnp.float32(n)
        var = jnp.maximum(fssq / jnp.float32(n) - mean * mean, 0.0)   # biased batch var
        scale = gamma_p * jax.lax.rsqrt(var + BN_EPS)
        shift = beta_p - mean * scale

        # ---- Phase 2: BN + LeakyReLU + fc + softmax (batch-parallel). ----
        logits_p, probs_p = pl.pallas_call(
            functools.partial(_phase2_kernel, n_classes=out_dim, n_class_pad=out_p),
            out_shape=(
                jax.ShapeDtypeStruct((n, out_p), f32),
                jax.ShapeDtypeStruct((n, out_p), f32),
            ),
            grid_spec=pltpu.PrefetchScalarGridSpec(
                num_scalar_prefetch=0,
                grid=(n_tiles,),
                in_specs=[
                    pl.BlockSpec((tile_n, bottle_p), lambda i: (i, 0)),   # feat tiles
                    pl.BlockSpec((1, bottle_p), lambda i: (0, 0)),        # BN scale
                    pl.BlockSpec((1, bottle_p), lambda i: (0, 0)),        # BN shift
                    pl.BlockSpec((bottle_p, out_p), lambda i: (0, 0)),    # W2 (resident)
                    pl.BlockSpec((1, out_p), lambda i: (0, 0)),           # b2
                ],
                out_specs=(
                    pl.BlockSpec((tile_n, out_p), lambda i: (i, 0)),
                    pl.BlockSpec((tile_n, out_p), lambda i: (i, 0)),
                ),
            ),
            compiler_params=pltpu.CompilerParams(
                dimension_semantics=("parallel",),
                vmem_limit_bytes=vmem_limit),
        )(feat_p, scale, shift, w2_p, b2_p)

    feat = feat_p if bottle == bottle_p else feat_p[:, :bottle]
    logits = logits_p if out_dim == out_p else logits_p[:, :out_dim]
    probs = probs_p if out_dim == out_p else probs_p[:, :out_dim]
    return [x, feat, logits, probs]


def init_params(key, in_dim, out_dim, bottle_neck_dim):
    """Deterministic init mimicking nn.Linear defaults (U(-1/sqrt(fan_in), ...))."""
    k1, k2, k3, k4 = jax.random.split(key, 4)
    lim1 = 1.0 / float(jnp.sqrt(jnp.float32(in_dim)))
    lim2 = 1.0 / float(jnp.sqrt(jnp.float32(bottle_neck_dim)))
    w1 = jax.random.uniform(k1, (in_dim, bottle_neck_dim), jnp.float32, -lim1, lim1)
    b1 = jax.random.uniform(k2, (1, bottle_neck_dim), jnp.float32, -lim1, lim1)
    w2 = jax.random.uniform(k3, (bottle_neck_dim, out_dim), jnp.float32, -lim2, lim2)
    b2 = jax.random.uniform(k4, (1, out_dim), jnp.float32, -lim2, lim2)
    gamma = jnp.ones((1, bottle_neck_dim), jnp.float32)   # BatchNorm1d weight
    beta = jnp.zeros((1, bottle_neck_dim), jnp.float32)   # BatchNorm1d bias
    return w1, b1, gamma, beta, w2, b2


def _reference(x, w1, b1, gamma, beta, w2, b2):
    """Plain-JAX reference with the same bf16 MXU-input precision choice."""
    feat = jnp.dot(x.astype(MXU_DTYPE), w1.astype(MXU_DTYPE),
                   preferred_element_type=jnp.float32) + b1
    mu = feat.mean(0, keepdims=True)
    var = ((feat - mu) ** 2).mean(0, keepdims=True)
    bn = (feat - mu) / jnp.sqrt(var + BN_EPS) * gamma + beta
    act = jnp.where(bn >= 0, bn, 0.2 * bn)
    logits = jnp.dot(act.astype(MXU_DTYPE), w2.astype(MXU_DTYPE),
                     preferred_element_type=jnp.float32) + b2
    probs = jax.nn.softmax(logits, axis=-1)
    return feat, logits, probs


if __name__ == "__main__":
    # Small shapes consistent with the module: batch=12, in_dim=32,
    # bottle_neck_dim=64, out_dim=10 (padded internally to 128 lanes).
    batch, in_dim, bottle, out_dim = 12, 32, 64, 10

    key = jax.random.PRNGKey(0)
    kx, kp = jax.random.split(key)
    x = jax.random.normal(kx, (batch, in_dim), jnp.float32)
    params = init_params(kp, in_dim, out_dim, bottle)

    feat_ref, logits_ref, probs_ref = _reference(x, *params)

    # Run once with the default config (fused single-call fast path) and once with a
    # tiny tile so the tiled two-phase path (ragged last tile + partial BN stats)
    # is exercised.
    for max_tile_n in (512, 8):
        outs = cls_forward(x, *params, max_tile_n=max_tile_n)
        outs = [jax.block_until_ready(o) for o in outs]

        assert outs[0].shape == (batch, in_dim)
        assert outs[1].shape == (batch, bottle)
        assert outs[2].shape == (batch, out_dim)
        assert outs[3].shape == (batch, out_dim)
        assert jnp.allclose(outs[1], feat_ref, atol=1e-3, rtol=1e-3), "feat mismatch"
        assert jnp.allclose(outs[2], logits_ref, atol=2e-3, rtol=2e-3), "logits mismatch"
        assert jnp.allclose(outs[3], probs_ref, atol=2e-3, rtol=2e-2), "probs mismatch"
        assert jnp.allclose(jnp.sum(outs[3], axis=-1), 1.0, atol=1e-3), "probs not normalized"

    print("KERNEL_OK")
</pallas_src>

<mosaic_0001>
module attributes {stable_mosaic.version = 11 : i64} {
  func.func @_fused_kernel(%arg0: memref<12x32xf32, #tpu.memory_space<vmem>>, %arg1: memref<32x128xbf16, #tpu.memory_space<vmem>>, %arg2: memref<1x128xf32, #tpu.memory_space<vmem>>, %arg3: memref<1x128xf32, #tpu.memory_space<vmem>>, %arg4: memref<1x128xf32, #tpu.memory_space<vmem>>, %arg5: memref<128x128xbf16, #tpu.memory_space<vmem>>, %arg6: memref<1x128xf32, #tpu.memory_space<vmem>>, %arg7: memref<12x128xf32, #tpu.memory_space<vmem>>, %arg8: memref<12x128xf32, #tpu.memory_space<vmem>>, %arg9: memref<12x128xf32, #tpu.memory_space<vmem>>) attributes {dimension_semantics = [], scalar_prefetch = 0 : i64, scratch_operands = 0 : i64, tpu.core_type = #tpu.core_type<tc>} {
    %c0 = arith.constant 0 : index
    %c0_0 = arith.constant 0 : index
    %0 = vector.load %arg0[%c0, %c0_0] : memref<12x32xf32, #tpu.memory_space<vmem>>, vector<12x32xf32>
    %1 = arith.truncf %0 : vector<12x32xf32> to vector<12x32xbf16>
    %c0_1 = arith.constant 0 : index
    %c0_2 = arith.constant 0 : index
    %2 = vector.load %arg1[%c0_1, %c0_2] : memref<32x128xbf16, #tpu.memory_space<vmem>>, vector<32x128xbf16>
    %cst = arith.constant dense<0.000000e+00> : vector<12x128xf32>
    %3 = tpu.matmul %1, %2, %cst {dimension_numbers = #tpu.dot_dimension_numbers<[1], [0], [0], [1], [0, 0, 1, 1], [], []>} : vector<12x32xbf16>, vector<32x128xbf16>, vector<12x128xf32> -> vector<12x128xf32>
    %c0_3 = arith.constant 0 : index
    %c0_4 = arith.constant 0 : index
    %4 = vector.load %arg2[%c0_3, %c0_4] : memref<1x128xf32, #tpu.memory_space<vmem>>, vector<1x128xf32>
    %5 = vector.broadcast %4 : vector<1x128xf32> to vector<12x128xf32>
    %6 = arith.addf %3, %5 : vector<12x128xf32>
    %c0_5 = arith.constant 0 : index
    %c0_6 = arith.constant 0 : index
    %7 = vector.load %arg7[%c0_5, %c0_6] : memref<12x128xf32, #tpu.memory_space<vmem>>, vector<12x128xf32>
    tpu.vector_store %arg7[%c0_5, %c0_6], %6 {strides = array<i32>} : memref<12x128xf32, #tpu.memory_space<vmem>>, vector<12x128xf32>,
    %cst_7 = arith.constant dense<0.000000e+00> : vector<128xf32>
    %8 = vector.multi_reduction <add>, %6, %cst_7 [0] : vector<12x128xf32> to vector<128xf32>
    %9 = vector.shape_cast %8 : vector<128xf32> to vector<1x128xf32>
    %cst_8 = arith.constant 1.200000e+01 : f32
    %10 = vector.broadcast %cst_8 : f32 to vector<1x128xf32>
    %11 = arith.divf %9, %10 : vector<1x128xf32>
    %12 = arith.mulf %6, %6 : vector<12x128xf32>
    %cst_9 = arith.constant dense<0.000000e+00> : vector<128xf32>
    %13 = vector.multi_reduction <add>, %12, %cst_9 [0] : vector<12x128xf32> to vector<128xf32>
    %14 = vector.shape_cast %13 : vector<128xf32> to vector<1x128xf32>
    %cst_10 = arith.constant 1.200000e+01 : f32
    %15 = vector.broadcast %cst_10 : f32 to vector<1x128xf32>
    %16 = arith.divf %14, %15 : vector<1x128xf32>
    %17 = arith.mulf %11, %11 : vector<1x128xf32>
    %18 = arith.subf %16, %17 : vector<1x128xf32>
    %cst_11 = arith.constant 0.000000e+00 : f32
    %19 = vector.broadcast %cst_11 : f32 to vector<1x128xf32>
    %20 = arith.maximumf %18, %19 : vector<1x128xf32>
    %c0_12 = arith.constant 0 : index
    %c0_13 = arith.constant 0 : index
    %21 = vector.load %arg3[%c0_12, %c0_13] : memref<1x128xf32, #tpu.memory_space<vmem>>, vector<1x128xf32>
    %cst_14 = arith.constant 9.99999974E-6 : f32
    %22 = vector.broadcast %cst_14 : f32 to vector<1x128xf32>
    %23 = arith.addf %20, %22 : vector<1x128xf32>
    %24 = math.rsqrt %23 : vector<1x128xf32>
    %25 = arith.mulf %21, %24 : vector<1x128xf32>
    %c0_15 = arith.constant 0 : index
    %c0_16 = arith.constant 0 : index
    %26 = vector.load %arg4[%c0_15, %c0_16] : memref<1x128xf32, #tpu.memory_space<vmem>>, vector<1x128xf32>
    %27 = arith.mulf %11, %25 : vector<1x128xf32>
    %28 = arith.subf %26, %27 : vector<1x128xf32>
    %29 = vector.broadcast %25 : vector<1x128xf32> to vector<12x128xf32>
    %30 = arith.mulf %6, %29 : vector<12x128xf32>
    %31 = vector.broadcast %28 : vector<1x128xf32> to vector<12x128xf32>
    %32 = arith.addf %30, %31 : vector<12x128xf32>
    %cst_17 = arith.constant 0.000000e+00 : f32
    %33 = vector.broadcast %cst_17 : f32 to vector<12x128xf32>
    %34 = arith.cmpf oge, %32, %33 : vector<12x128xf32>
    %cst_18 = arith.constant 2.000000e-01 : f32
    %35 = vector.broadcast %cst_18 : f32 to vector<12x128xf32>
    %36 = arith.mulf %35, %32 : vector<12x128xf32>
    %37 = arith.select %34, %32, %36 : vector<12x128xi1>, vector<12x128xf32>
    %38 = arith.truncf %37 : vector<12x128xf32> to vector<12x128xbf16>
    %c0_19 = arith.constant 0 : index
    %c0_20 = arith.constant 0 : index
    %39 = vector.load %arg5[%c0_19, %c0_20] : memref<128x128xbf16, #tpu.memory_space<vmem>>, vector<128x128xbf16>
    %cst_21 = arith.constant dense<0.000000e+00> : vector<12x128xf32>
    %40 = tpu.matmul %38, %39, %cst_21 {dimension_numbers = #tpu.dot_dimension_numbers<[1], [0], [0], [1], [0, 0, 1, 1], [], []>} : vector<12x128xbf16>, vector<128x128xbf16>, vector<12x128xf32> -> vector<12x128xf32>
    %c0_22 = arith.constant 0 : index
    %c0_23 = arith.constant 0 : index
    %41 = vector.load %arg6[%c0_22, %c0_23] : memref<1x128xf32, #tpu.memory_space<vmem>>, vector<1x128xf32>
    %42 = vector.broadcast %41 : vector<1x128xf32> to vector<12x128xf32>
    %43 = arith.addf %40, %42 : vector<12x128xf32>
    %c0_24 = arith.constant 0 : index
    %c0_25 = arith.constant 0 : index
    %44 = vector.load %arg8[%c0_24, %c0_25] : memref<12x128xf32, #tpu.memory_space<vmem>>, vector<12x128xf32>
    tpu.vector_store %arg8[%c0_24, %c0_25], %43 {strides = array<i32>} : memref<12x128xf32, #tpu.memory_space<vmem>>, vector<12x128xf32>,
    %45 = tpu.iota {dimensions = array<i32: 1>} : vector<12x128xi32>
    %c10_i32 = arith.constant 10 : i32
    %46 = vector.broadcast %c10_i32 : i32 to vector<12x128xi32>
    %47 = arith.cmpi slt, %45, %46 : vector<12x128xi32>
    %cst_26 = arith.constant -1.000000e+30 : f32
    %48 = vector.broadcast %cst_26 : f32 to vector<12x128xf32>
    %49 = arith.select %47, %43, %48 : vector<12x128xi1>, vector<12x128xf32>
    %cst_27 = arith.constant dense<0xFF800000> : vector<12xf32>
    %50 = vector.multi_reduction <maximumf>, %49, %cst_27 [1] : vector<12x128xf32> to vector<12xf32>
    %51 = vector.shape_cast %50 : vector<12xf32> to vector<12x1xf32>
    %52 = vector.broadcast %51 : vector<12x1xf32> to vector<12x128xf32>
    %53 = arith.subf %49, %52 : vector<12x128xf32>
    %54 = math.exp %53 : vector<12x128xf32>
    %cst_28 = arith.constant dense<0.000000e+00> : vector<12xf32>
    %55 = vector.multi_reduction <add>, %54, %cst_28 [1] : vector<12x128xf32> to vector<12xf32>
    %56 = vector.shape_cast %55 : vector<12xf32> to vector<12x1xf32>
    %57 = vector.broadcast %56 : vector<12x1xf32> to vector<12x128xf32>
    %58 = arith.divf %54, %57 : vector<12x128xf32>
    %c0_29 = arith.constant 0 : index
    %c0_30 = arith.constant 0 : index
    %59 = vector.load %arg9[%c0_29, %c0_30] : memref<12x128xf32, #tpu.memory_space<vmem>>, vector<12x128xf32>
    tpu.vector_store %arg9[%c0_29, %c0_30], %58 {strides = array<i32>} : memref<12x128xf32, #tpu.memory_space<vmem>>, vector<12x128xf32>,
    return
  }
}

</mosaic_0001>

<bundles_post_ra>
// kernel: tpu_custom_call.1
= control target key start
LH: loop header
LB: loop body
LE: loop exit
PB: predicated region body
PF: predicated region fallthrough
CT: control target
= control target key end

     0   :  { %15 = vsyncpa [#allocation3], 0  ;;  %s720_s0 = inlined_call_operand.hbm [shape: f32[12,32], index: 0, kind: input, shape index: {}]   ;;  %s721_s1 = inlined_call_operand.hbm [shape: bf16[32,128], index: 1, kind: input, shape index: {}]   ;;  %s722_s2 = inlined_call_operand.vmem [shape: f32[1,128], index: 2, kind: input, shape index: {}]   ;;  %s723_s3 = inlined_call_operand.vmem [shape: f32[1,128], index: 3, kind: input, shape index: {}]   ;;  %s724_s4 = inlined_call_operand.vmem [shape: f32[1,128], index: 4, kind: input, shape index: {}]   ;;  %s725_s5 = inlined_call_operand.hbm [shape: bf16[128,128], index: 5, kind: input, shape index: {}]   ;;  %s726_s6 = inlined_call_operand.vmem [shape: f32[1,128], index: 6, kind: input, shape index: {}]   ;;  %s727_s7 = inlined_call_operand.hbm [shape: f32[12,128], index: 7, kind: output, shape index: {0}]   ;;  %s728_s8 = inlined_call_operand.hbm [shape: f32[12,128], index: 8, kind: output, shape index: {1}]   ;;  %s729_s9 = inlined_call_operand.hbm [shape: f32[12,128], index: 9, kind: output, shape index: {2}]  }
   0x1   :  { %16 = vsyncpa [#allocation6], 0 }
   0x2   :  { %17 = vsyncpa [#allocation4], 0  ;;  %s36_s11 = sshll.u32 %s721_s1, 4  ;;  %s37_s11 = int_to_ptr.hbm [resolvable:$true] %s36_s11 }
   0x3   :  { %18 = vsyncpa [#allocation10], 0  ;;  %s606_s12 = smov [#allocation5]   ;;  %s23_s16 = sshll.u32 %s720_s0, 4  ;;  %s24_s16 = int_to_ptr.hbm [resolvable:$true] %s23_s16 }
   0x4   :  { %s38_s13 = sshll.u32 %s606_s12, 4  ;;  %s607_s17 = smov 64   ;;  %s39_s13 = int_to_ptr.vmem [resolvable:$true] %s38_s13 }
   0x5   :  { %s608_s18 = smov 4   ;;  %s609_s19 = smov [#allocation2]  }
   0x6   :  { %44 = dma.hbm_to_vmem [thread:$0]  %s37_s11, 256, %s39_s13, [#allocation6], %s607_s17, %s607_s17, %s608_s18  }
   0x7   :  { %s25_s20 = sshll.u32 %s609_s19, 4  ;;  %s610_s21 = smov 128   ;;  %s26_s20 = int_to_ptr.vmem [resolvable:$true] %s25_s20 }
   0x8   :  { %s611_s22 = smov 8   ;;  %s55_s24 = sshll.u32 %s725_s5, 4  ;;  %s56_s24 = int_to_ptr.hbm [resolvable:$true] %s55_s24 }
   0x9   :  { %31 = dma.hbm_to_vmem [thread:$0]  %s24_s16, 256, %s26_s20, [#allocation3], %s610_s21, %s610_s21, %s611_s22  }
   0xa   :  { %s612_s25 = smov [#allocation7]  }
   0xb   :  { %s57_s0 = sshll.u32 %s612_s25, 4  ;;  %s58_s0 = int_to_ptr.vmem [resolvable:$true] %s57_s0 }
   0xc   :  { %63 = dma.hbm_to_vmem [thread:$0]  %s56_s24, 1024, %s58_s0, [#allocation6], %s607_s17, %s607_s17, %s608_s18  }
   0xd   :  { %598 = dma.done.wait [#allocation3], 256  }
   0xe   :  { %599 = vsyncadd [#allocation3], 4294967040 }
   0xf   :  { %600 = dma.done.wait [#allocation6], 1280  }
  0x10   :  { %601 = vsyncadd [#allocation6], 4294966016  ;;  %v420_v0 = vld [vmem:[#allocation5 + $0x8] sm:$0xff]  ;;  %v419_v1 = vld [vmem:[#allocation5] sm:$0xff]  ;;  %vm102_vm0 = vcmask 261120   ;;  %v613_v6 = vmov 12.0  }
  0x11   :  { %112 = vmatpush.bf16.msra.mxu0 %v420_v0  ;;  %v79_v2 = vld [vmem:[#allocation2] sm:$0xff]  ;;  %v80_v3 = vld [vmem:[#allocation2 + $0x8] sm:$0xf]  ;;  %442 = vrcp.f32 %v613_v6  ;;  %v428_v10 = vld [vmem:[#allocation7 + $0x38] sm:$0xff]  ;;  %vm122_vm1 = vcmask 1043456   ;;  %s342_s12 = sshll.u32 %s728_s8, 4  ;;  %s343_s12 = int_to_ptr.hbm [resolvable:$true] %s342_s12 }
  0x12   :  { %v81_v4 = vpack.c.bf16 %v80_v3, %v79_v2  ;;  %v440_v5 = vld [vmem:[%s722_s2] ss:$0 sm:$0xff]  ;;  %254 = vmatpush.bf16.msra.mxu1 %v428_v10  ;;  %v427_v13 = vld [vmem:[#allocation7 + $0x30] sm:$0xff]  ;;  %v426_v20 = vld [vmem:[#allocation7 + $0x28] sm:$0xff]  ;;  %s329_s15 = sshll.u32 %s727_s7, 4  ;;  %s615_s16 = smov [#allocation8]   ;;  %s330_s15 = int_to_ptr.hbm [resolvable:$true] %s329_s15 }
  0x13   :  { %v425_v27 = vld [vmem:[#allocation7 + $0x20] sm:$0xff]  ;;  %v424_v33 = vld [vmem:[#allocation7 + $0x18] sm:$0xff]  ;;  %v423_v39 = vld [vmem:[#allocation7 + $0x10] sm:$0xff]  ;;  %s327_s17 = sshll.u32 %s615_s16, 4  ;;  %s616_s7 = smov [#allocation11]   ;;  %s328_s17 = int_to_ptr.vmem [resolvable:$true] %s327_s17 }
  0x14   :  { %v422_v42 = vld [vmem:[#allocation7 + $0x8] sm:$0xff]  ;;  %v421_v46 = vld [vmem:[#allocation7] sm:$0xff]  ;;  %s353_s8 = sshll.u32 %s616_s7, 4  ;;  %s355_s20 = sshll.u32 %s729_s9, 4  ;;  %s354_s8 = int_to_ptr.vmem [resolvable:$true] %s353_s8  ;;  %s356_s20 = int_to_ptr.hbm [resolvable:$true] %s355_s20 }
  0x15   :  { %113 = vmatpush.bf16.msra.mxu0 %v419_v1  ;;  %v153_v54 = vld [vmem:[%s723_s3] sm:$0x1] }
  0x16   :  { %255 = vmatpush.bf16.msra.mxu1 %v427_v13  ;;  %v166_v58 = vld [vmem:[%s724_s4] sm:$0x1]  ;;  %s614_s4 = smov [#allocation9]  }
  0x17   :  { %v443_v9 = vpop.eup %442 }
  0x18   :  { %386 = vmatmul.msk.bf16.vlgmr.msra.gmra.mxu0 %vm102_vm0, %v81_v4  ;;  %v132_v11 = vmul.f32 12.0, %v443_v9  ;;  %vm136_vm2 = vweird.f32 %v443_v9 }
  0x1a   :  { %v133_v16 = vsub.f32 1.0, %v132_v11  ;;  %256 = vmatpush.bf16.msra.mxu1 %v426_v20 }
  0x1c   :  { %v134_v24 = vmul.f32 %v443_v9, %v133_v16 }
  0x1e   :  { %257 = vmatpush.bf16.msra.mxu1 %v425_v27  ;;  %v135_v30 = vadd.f32 %v443_v9, %v134_v24 }
  0x20   :  { %v137_v36 = vsel %vm136_vm2, %v443_v9, %v135_v30  ;;  %v441_v9 = vld [vmem:[%s726_s6] ss:$0 sm:$0xff]  ;;  %s340_s6 = sshll.u32 %s614_s4, 4  ;;  %s341_s6 = int_to_ptr.vmem [resolvable:$true] %s340_s6 }
  0x22   :  { %258 = vmatpush.bf16.msra.mxu1 %v424_v33 }
  0x26   :  { %259 = vmatpush.bf16.msra.mxu1 %v423_v39 }
  0x2a   :  { %260 = vmatpush.bf16.msra.mxu1 %v422_v42 }
  0x2e   :  { %261 = vmatpush.bf16.msra.mxu1 %v421_v46 }
  0x95   :  { %v115_v7 = vpop.f32.mrf.mxu0 }
  0x96   :  { %v682_v8 = vadd.f32 %v440_v5, %v115_v7 }
  0x98   :  { %120 = vst [vmem:[#allocation8] sm:$0xff] %v682_v8  ;;  %v139_v18 = vmul.f32 %v682_v8, %v682_v8 }
  0x9d   :  { %v117_v12 = vpop.f32.mrf.mxu0 }
  0x9e   :  { %v118_v14 = vadd.f32 %v440_v5, %v117_v12  ;;  %v270_v12 = vlaneseq }
  0xa0   :  { %v123_v15 = vsel %vm122_vm1, %v118_v14, 0.0  ;;  %v140_v17 = vmul.f32 %v118_v14, %v118_v14  ;;  %121 = vst [vmem:[#allocation8 + $0x8] sm:$0xf] %v118_v14 }
  0xa1   :  { %v124_v19 = vadd.f32 %v123_v15, %v682_v8  ;;  %335 = dma.vmem_to_hbm [thread:$0]  %s328_s17, 256, %s330_s15, [#allocation4], %s610_s21, %s610_s21, %s611_s22  }
  0xa2   :  { %v141_v21 = vsel %vm122_vm1, %v140_v17, 0.0 }
  0xa3   :  { %v125_v22 = vrot.slane %v124_v19, 4  ;;  %v142_v23 = vadd.f32 %v141_v21, %v139_v18 }
  0xa5   :  { %v126_v25 = vadd.f32 %v125_v22, %v124_v19  ;;  %v143_v26 = vrot.slane %v142_v23, 4 }
  0xa7   :  { %v127_v28 = vrot.slane %v126_v25, 2  ;;  %v144_v29 = vadd.f32 %v143_v26, %v142_v23 }
  0xa9   :  { %v128_v31 = vadd.f32 %v127_v28, %v126_v25  ;;  %v145_v32 = vrot.slane %v144_v29, 2 }
  0xab   :  { %v129_v34 = vrot.slane %v128_v31, 1  ;;  %v146_v35 = vadd.f32 %v145_v32, %v144_v29 }
  0xad   :  { %v130_v37 = vadd.f32 %v129_v34, %v128_v31  ;;  %v147_v38 = vrot.slane %v146_v35, 1 }
  0xaf   :  { %v138_v40 = vmul.f32 %v137_v36, %v130_v37  ;;  %v148_v41 = vadd.f32 %v147_v38, %v146_v35 }
  0xb1   :  { %v149_v43 = vmul.f32 %v148_v41, %v137_v36  ;;  %v150_v44 = vmul.f32 %v138_v40, %v138_v40 }
  0xb3   :  { %v151_v45 = vsub.f32 %v149_v43, %v150_v44 }
  0xb5   :  { %v152_v47 = vmax.f32 %v151_v45, 0.0 }
  0xb7   :  { %v154_v48 = vadd.f32 1e-05, %v152_v47 }
  0xb9   :  { %444 = vrsqrt.f32 %v154_v48  ;;  %vm161_vm4 = vweird.f32 %v154_v48 }
  0xbf   :  { %v445_v49 = vpop.eup %444 }
  0xc0   :  { %v156_v50 = vmul.f32 %v445_v49, %v154_v48  ;;  %vm162_vm3 = vweird.f32 %v445_v49 }
  0xc1   :  { %vm163_vm5 = vmor %vm161_vm4, %vm162_vm3 }
  0xc2   :  { %v157_v51 = vmul.f32 %v445_v49, %v156_v50 }
  0xc4   :  { %v158_v52 = vmul.f32 0.5, %v157_v51 }
  0xc6   :  { %v159_v53 = vsub.f32 1.5, %v158_v52 }
  0xc8   :  { %v160_v55 = vmul.f32 %v445_v49, %v159_v53 }
  0xca   :  { %v164_v56 = vsel %vm163_vm5, %v445_v49, %v160_v55 }
  0xcb   :  { %v165_v57 = vmul.f32 %v164_v56, %v153_v54 }
  0xcd   :  { %v170_v59 = vperm.slane %v165_v57, 0  ;;  %v167_v60 = vmul.f32 %v165_v57, %v138_v40 }
  0xcf   :  { %v168_v61 = vsub.f32 %v166_v58, %v167_v60  ;;  %v173_v62 = vmul.f32 %v170_v59, %v118_v14  ;;  %v172_v63 = vmul.f32 %v170_v59, %v682_v8  ;;  %v271_v8 = vand.u32 127, %v270_v12 }
  0xd1   :  { %v175_v0 = vperm.slane %v168_v61, 0  ;;  %vm272_vm8 = vcmp.lt.s32.totalorder %v271_v8, 10 }
  0xd3   :  { %v177_v1 = vadd.f32 %v175_v0, %v172_v63  ;;  %v178_v2 = vadd.f32 %v175_v0, %v173_v62 }
  0xd5   :  { %vm179_vm6 = vcmp.ge.f32.partialorder %v177_v1, 0.0  ;;  %vm180_vm7 = vcmp.ge.f32.partialorder %v178_v2, 0.0  ;;  %v181_v3 = vmul.f32 0.2, %v177_v1  ;;  %v182_v4 = vmul.f32 0.2, %v178_v2 }
  0xd7   :  { %v183_v5 = vsel %vm179_vm6, %v177_v1, %v181_v3  ;;  %v184_v6 = vsel %vm180_vm7, %v178_v2, %v182_v4 }
  0xd8   :  { %v185_v7 = vpack.c.bf16 %v184_v6, %v183_v5 }
  0xda   :  { %262 = vmatmul.bf16.vlgmr.msra.gmra.mxu1 %v185_v7 }
 0x157   :  { %v263_v10 = vpop.f32.mrf.mxu1 }
 0x158   :  { %v264_v11 = vadd.f32 %v441_v9, %v263_v10 }
 0x15a   :  { %268 = vst [vmem:[#allocation9] sm:$0xff] %v264_v11  ;;  %v273_v17 = vsel %vm272_vm8, %v264_v11, -1e+30 }
 0x15f   :  { %v265_v13 = vpop.f32.mrf.mxu1 }
 0x160   :  { %v266_v14 = vadd.f32 %v441_v9, %v265_v13 }
 0x162   :  { %269 = vst [vmem:[#allocation9 + $0x8] sm:$0xf] %v266_v14  ;;  %v274_v15 = vsel %vm272_vm8, %v266_v14, -1e+30 }
 0x163   :  { %v277_v16 = vsel %vm122_vm1, %v274_v15, -inf  ;;  %348 = dma.vmem_to_hbm [thread:$0]  %s341_s6, 256, %s343_s12, [#allocation10], %s610_s21, %s610_s21, %s611_s22  }
 0x164   :  { %278 = vmax.xlane.f32.xlu0 %v277_v16 }
 0x16c   :  { %275 = vmax.xlane.f32.xlu0 %v273_v17 }
 0x1d7   :  { %v279_v18 = vpop.xlane.xlu0 %278 }
 0x1d8   :  { %v281_v21 = vsub.f32 %v274_v15, %v279_v18 }
 0x1da   :  { %v284_v23 = vmul.f32 1.442695, %v281_v21 }
 0x1df   :  { %v276_v19 = vpop.xlane.xlu0 %275 }
 0x1e0   :  { %v280_v20 = vsub.f32 %v273_v17, %v276_v19 }
 0x1e2   :  { %v282_v22 = vmul.f32 1.442695, %v280_v20 }
 0x1e4   :  { %446 = vpow2.f32 %v282_v22 }
 0x1e5   :  { %448 = vpow2.f32 %v284_v23 }
 0x1ea   :  { %v447_v24 = vpop.eup %446 }
 0x1eb   :  { %286 = vadd.xlane.f32.xlu1 %v447_v24  ;;  %v449_v25 = vpop.eup %448 }
 0x1ec   :  { %v288_v26 = vsel %vm122_vm1, %v449_v25, 0.0 }
 0x1f3   :  { %289 = vadd.xlane.f32.xlu1 %v288_v26 }
 0x25e   :  { %v287_v27 = vpop.xlane.xlu1 %286 }
 0x25f   :  { %450 = vrcp.f32 %v287_v27  ;;  %v302_v32 = vand.u32 2147483648, %v287_v27  ;;  %v300_v34 = vand.u32 2147483647, %v287_v27  ;;  %vm296_vm10 = vweird.f32 %v287_v27 }
 0x261   :  { %v303_v37 = vor.u32 1.1754944e-38, %v302_v32  ;;  %vm301_vm12 = vcmp.eq.f32.partialorder %v300_v34, 8.507059e+37 }
 0x265   :  { %v451_v28 = vpop.eup %450 }
 0x266   :  { %v292_v29 = vmul.f32 %v451_v28, %v287_v27  ;;  %v290_v30 = vpop.xlane.xlu1 %289  ;;  %vm297_vm9 = vweird.f32 %v451_v28 }
 0x267   :  { %452 = vrcp.f32 %v290_v30  ;;  %vm298_vm11 = vmor %vm296_vm10, %vm297_vm9  ;;  %v317_v43 = vand.u32 2147483648, %v290_v30  ;;  %v315_v45 = vand.u32 2147483647, %v290_v30  ;;  %vm311_vm14 = vweird.f32 %v290_v30 }
 0x268   :  { %v293_v31 = vsub.f32 1.0, %v292_v29 }
 0x269   :  { %v318_v47 = vor.u32 1.1754944e-38, %v317_v43  ;;  %vm316_vm0 = vcmp.eq.f32.partialorder %v315_v45, 8.507059e+37 }
 0x26a   :  { %v294_v33 = vmul.f32 %v451_v28, %v293_v31 }
 0x26c   :  { %v295_v35 = vadd.f32 %v451_v28, %v294_v33 }
 0x26d   :  { %v453_v36 = vpop.eup %452 }
 0x26e   :  { %v299_v38 = vsel %vm298_vm11, %v451_v28, %v295_v35  ;;  %v307_v39 = vmul.f32 %v453_v36, %v290_v30  ;;  %vm312_vm13 = vweird.f32 %v453_v36 }
 0x26f   :  { %v304_v40 = vsel %vm301_vm12, %v303_v37, %v299_v38  ;;  %vm313_vm15 = vmor %vm311_vm14, %vm312_vm13 }
 0x270   :  { %v308_v41 = vsub.f32 1.0, %v307_v39  ;;  %v305_v42 = vmul.f32 %v447_v24, %v304_v40 }
 0x272   :  { %v309_v44 = vmul.f32 %v453_v36, %v308_v41  ;;  %321 = vst [vmem:[#allocation11] sm:$0xff] %v305_v42 }
 0x274   :  { %v310_v46 = vadd.f32 %v453_v36, %v309_v44 }
 0x276   :  { %v314_v48 = vsel %vm313_vm15, %v453_v36, %v310_v46 }
 0x277   :  { %v319_v49 = vsel %vm316_vm0, %v318_v47, %v314_v48 }
 0x278   :  { %v320_v50 = vmul.f32 %v449_v25, %v319_v49 }
 0x27a   :  { %322 = vst [vmem:[#allocation11 + $0x8] sm:$0xf] %v320_v50 }
 0x27b   :  { %361 = dma.vmem_to_hbm [thread:$0]  %s354_s8, 256, %s356_s20, [#allocation10], %s610_s21, %s610_s21, %s611_s22  }
 0x27c   :  { %602 = dma.done.wait [#allocation4], 256  }
 0x27d   :  { %603 = vsyncadd [#allocation4], 4294967040 }
 0x27e   :  { %604 = dma.done.wait [#allocation10], 512  }
 0x27f   :  { %605 = vsyncadd [#allocation10], 4294966784 }
 0x280   :  { %374 = vsyncpa [#allocation3], 1 }
 0x281   :  { %375 = vsyncpa [#allocation6], 1 }
 0x282   :  { %376 = vsyncpa [#allocation4], 1 }
 0x283   :  { %377 = vsyncpa [#allocation10], 1 }

</bundles_post_ra>
